<compile_context>
chip_gen: v7x
topology: tpu7x:2x2x1
jax: 0.10.0
libtpu: 0.0.40
codegen_flags: <defaults>
</compile_context>

<pallas_src>
import math

import jax
import jax.numpy as jnp
from jax.experimental import pallas as pl
from jax.experimental.pallas import tpu as pltpu

# ---------------- model dims (small, consistent with the module) ----------------
B = 2          # batch
T = 8          # seq_len
D = 32         # hidden_size
NH = 4         # num_heads
HD = D // NH   # head_dim
# GatedFFN hidden: int(2*(4*D)/3) rounded up to multiple_of=256
_FF = int(2 * (4 * D) / 3)
HF = 256 * ((_FF + 256 - 1) // 256)   # = 256
LN_EPS = 1e-5
MASK_NEG = -1e30                       # finite additive mask (no -inf intermediates)
NEG_MIN = float(jnp.finfo(jnp.float32).min)   # only used by the torch-faithful reference

BT = B * T             # 16 rows after folding batch into rows
ROWS = B * NH * T      # 64 batch+head-stacked rows

# ---- weight-pack column offsets (all weights share the D=32 row dim) ----
WOFF_QKV = 0                    # (D, 3D)
WOFF_OUT = 3 * D                # (D, D)
WOFF_W13 = 4 * D                # (D, 2*HF)  -> lands on a 128-aligned lane offset
WOFF_FF = 4 * D + 2 * HF        # (D, HF)    -> 128-aligned, wff stored transposed
WOFF_SWAP = 4 * D + 3 * HF      # (D, D)     RoPE pair-swap matrix
WTOT = 4 * D + 3 * HF + D       # 928

# ---- bias/LN-pack column offsets ----
OFF_LN1W = 0
OFF_LN1B = D
OFF_LN2W = 2 * D
OFF_LN2B = 3 * D
OFF_BQKV = 4 * D
OFF_BOUT = 7 * D
OFF_BFF = 8 * D
OFF_B13 = 9 * D
BTOT = 9 * D + 2 * HF           # 800


# ------------------------------- Pallas kernel ----------------------------------
def ar_block_kernel(xcs_ref, w_ref, b_ref, m_ref, y_ref):
    xcs = xcs_ref[...]                        # (BT, 3D)  [x | cos | sin]
    x = xcs[:, 0:D]
    cos = xcs[:, D:2 * D]
    sin = xcs[:, 2 * D:3 * D]

    hmask = m_ref[:, 0:D]                     # (ROWS, D)  head-column mask
    abias = m_ref[:, D:D + BT]                # (ROWS, BT) causal + cross-batch bias

    def layernorm(v, g, bias):
        mu = jnp.mean(v, axis=-1, keepdims=True)
        var = jnp.mean((v - mu) ** 2, axis=-1, keepdims=True)
        return (v - mu) * jax.lax.rsqrt(var + LN_EPS) * g + bias

    # ---- norm_1 + fused QKV projection (all batches at once) ----
    h = layernorm(x, b_ref[:, OFF_LN1W:OFF_LN1W + D], b_ref[:, OFF_LN1B:OFF_LN1B + D])
    qkv = jnp.dot(h, w_ref[:, WOFF_QKV:WOFF_QKV + 3 * D],
                  preferred_element_type=jnp.float32) + b_ref[:, OFF_BQKV:OFF_BQKV + 3 * D]
    q = qkv[:, 0:D]
    k = qkv[:, D:2 * D]
    v = qkv[:, 2 * D:3 * D]

    # ---- RoPE on q and k together (one swap matmul instead of two) ----
    # swap matrix S (precomputed in wrapper): (t @ S)[:, 2i] = -t[:, 2i+1],
    #                                         (t @ S)[:, 2i+1] =  t[:, 2i]
    swap = w_ref[:, WOFF_SWAP:WOFF_SWAP + D]                    # (D, D)
    qk = jnp.concatenate([q, k], axis=0)                        # (2*BT, D)
    cos2 = jnp.concatenate([cos, cos], axis=0)
    sin2 = jnp.concatenate([sin, sin], axis=0)
    qk = qk * cos2 + jnp.dot(qk, swap, preferred_element_type=jnp.float32) * sin2
    q = qk[0:BT, :]
    k = qk[BT:2 * BT, :]

    # ---- attention: all batches & heads in two MXU ops ----
    # batch+head-stacked queries: row (b*NH + h)*T + i holds q[b*T + i] masked to
    # head h's feature columns, so contracting the full D axis against k gives the
    # per-head scores; cross-batch columns are killed by the additive bias.
    q_stack = jnp.concatenate(
        [q[bb * T:(bb + 1) * T, :] for bb in range(B) for _ in range(NH)],
        axis=0) * hmask                                          # (ROWS, D)
    s = jax.lax.dot_general(q_stack, k, (((1,), (1,)), ((), ())),
                            preferred_element_type=jnp.float32)  # (ROWS, BT)
    s = s * (1.0 / math.sqrt(HD)) + abias
    s = s - jnp.max(s, axis=-1, keepdims=True)
    p = jnp.exp(s)
    p = p * pl.reciprocal(jnp.sum(p, axis=-1, keepdims=True), approx=True)
    o_full = jnp.dot(p, v, preferred_element_type=jnp.float32) * hmask   # (ROWS, D)

    # collapse head-stacked rows back to (BT, D): after masking, each head block only
    # has its own head's columns non-zero, so summing the NH row blocks is the merge.
    parts = []
    for bb in range(B):
        acc = o_full[bb * NH * T:bb * NH * T + T, :]
        for hh in range(1, NH):
            acc = acc + o_full[bb * NH * T + hh * T:bb * NH * T + (hh + 1) * T, :]
        parts.append(acc)
    attn = jnp.concatenate(parts, axis=0)                        # (BT, D)

    # ---- out projection + residual ----
    attn = jnp.dot(attn, w_ref[:, WOFF_OUT:WOFF_OUT + D],
                   preferred_element_type=jnp.float32) + b_ref[:, OFF_BOUT:OFF_BOUT + D]
    h1 = x + attn

    # ---- norm_2 + GatedFFN (fused W1|W3, swish gate) + residual ----
    h2 = layernorm(h1, b_ref[:, OFF_LN2W:OFF_LN2W + D], b_ref[:, OFF_LN2B:OFF_LN2B + D])
    u = jnp.dot(h2, w_ref[:, WOFF_W13:WOFF_W13 + 2 * HF],
                preferred_element_type=jnp.float32) + b_ref[:, OFF_B13:OFF_B13 + 2 * HF]
    a = u[:, 0:HF]
    g = u[:, HF:2 * HF]
    a = a * jax.nn.sigmoid(a)                                    # swish / SiLU
    # wff is stored transposed (D, HF) so the big weight is lane-dense; contract 1 vs 1.
    ff = jax.lax.dot_general(a * g, w_ref[:, WOFF_FF:WOFF_FF + HF],
                             (((1,), (1,)), ((), ())),
                             preferred_element_type=jnp.float32) + b_ref[:, OFF_BFF:OFF_BFF + D]

    y_ref[...] = h1 + ff


# --------------------------------- wrapper ---------------------------------------
def ar_block(x, rotary_pe, params):
    """x: (B,T,D) f32, rotary_pe: (B,T,HD//2,2) f32. Returns (B,T,D)."""
    # per-lane cos / sin maps tiled across heads: cos[..., h*HD+2i] = cos[..., h*HD+2i+1]
    cos_t = jnp.tile(jnp.repeat(rotary_pe[..., 0], 2, axis=-1), (1, 1, NH))   # (B, T, D)
    sin_t = jnp.tile(jnp.repeat(rotary_pe[..., 1], 2, axis=-1), (1, 1, NH))   # (B, T, D)
    xcs = jnp.concatenate([x, cos_t, sin_t], axis=-1).reshape(BT, 3 * D)      # (BT, 3D)

    # RoPE pair-swap matrix (block-diagonal over heads since HD is even)
    rr = jnp.arange(D)[:, None]
    cc = jnp.arange(D)[None, :]
    swap = (((rr % 2 == 0) & (cc == rr + 1)).astype(jnp.float32)
            - ((rr % 2 == 1) & (cc == rr - 1)).astype(jnp.float32))           # (D, D)

    # all weight matrices share the D-row dim -> one weight pack (big weights 128-aligned)
    w_pack = jnp.concatenate(
        [params["wqkv"], params["wout"],
         jnp.concatenate([params["w1"], params["w3"]], axis=1),
         params["wff"].T, swap], axis=1)                                      # (D, WTOT)

    # all LN/bias vectors -> one (1, BTOT) pack
    b_pack = jnp.concatenate(
        [params["ln1_w"], params["ln1_b"], params["ln2_w"], params["ln2_b"],
         params["bqkv"], params["bout"], params["bff"],
         params["b1"], params["b3"]]).reshape(1, BTOT)

    # precomputed masks: head-column mask + (causal & same-batch) additive bias
    r = jnp.arange(ROWS)
    rh = (r // T) % NH                                  # head of stacked row
    rb = r // (NH * T)                                  # batch of stacked row
    ri = r % T                                          # query position
    ch = jnp.arange(D) // HD                            # head of feature column
    hmask = (rh[:, None] == ch[None, :]).astype(jnp.float32)                 # (ROWS, D)
    cb = jnp.arange(BT) // T                            # batch of key row
    cj = jnp.arange(BT) % T                             # key position
    ok = (rb[:, None] == cb[None, :]) & (cj[None, :] <= ri[:, None])
    abias = jnp.where(ok, 0.0, MASK_NEG).astype(jnp.float32)                 # (ROWS, BT)
    masks = jnp.concatenate([hmask, abias], axis=1)                          # (ROWS, D+BT)

    full = lambda shp: pl.BlockSpec(shp, lambda i: (0, 0))
    out = pl.pallas_call(
        ar_block_kernel,
        out_shape=jax.ShapeDtypeStruct((BT, D), jnp.float32),
        grid=(1,),   # single invocation: batch folded into rows (v5e/v6e have 1 TC)
        in_specs=[full((BT, 3 * D)),        # x | cos | sin
                  full((D, WTOT)),          # wqkv | wout | w1|w3 | wff^T | swap
                  full((1, BTOT)),          # all LN weights / biases
                  full((ROWS, D + BT))],    # hmask | causal+batch bias
        out_specs=full((BT, D)),
    )(xcs, w_pack, b_pack, masks)
    return out.reshape(B, T, D)


# ----------------------------- plain-JAX reference -------------------------------
def ref_ar_block(x, rotary_pe, params):
    def layernorm(v, g, b):
        mu = jnp.mean(v, -1, keepdims=True)
        var = jnp.mean((v - mu) ** 2, -1, keepdims=True)
        return (v - mu) * jax.lax.rsqrt(var + LN_EPS) * g + b

    def rope(t, rpe):  # t: (B, NH, T, HD), rpe: (B, T, HD//2, 2)
        ts = t.reshape(*t.shape[:-1], HD // 2, 2)
        r = rpe[:, None]  # (B,1,T,HD//2,2)
        o0 = ts[..., 0] * r[..., 0] - ts[..., 1] * r[..., 1]
        o1 = ts[..., 1] * r[..., 0] + ts[..., 0] * r[..., 1]
        return jnp.stack([o0, o1], -1).reshape(t.shape)

    h = layernorm(x, params["ln1_w"], params["ln1_b"])
    qkv = h @ params["wqkv"] + params["bqkv"]
    q, k, v = jnp.split(qkv, 3, axis=-1)
    split = lambda t: t.reshape(B, T, NH, HD).transpose(0, 2, 1, 3)
    q, k, v = split(q), split(k), split(v)
    q, k = rope(q, rotary_pe), rope(k, rotary_pe)
    s = jnp.einsum("bhqd,bhkd->bhqk", q, k) / math.sqrt(HD)
    row = jnp.arange(T)[:, None]
    col = jnp.arange(T)[None, :]
    s = s + jnp.where(col <= row, 0.0, NEG_MIN)
    s = jnp.maximum(s, NEG_MIN)
    p = jax.nn.softmax(s, axis=-1)
    o = jnp.einsum("bhqk,bhkd->bhqd", p, v)
    o = o.transpose(0, 2, 1, 3).reshape(B, T, D)
    attn = o @ params["wout"] + params["bout"]
    h1 = x + attn
    h2 = layernorm(h1, params["ln2_w"], params["ln2_b"])
    a = h2 @ params["w1"] + params["b1"]
    a = a * jax.nn.sigmoid(a)
    g = h2 @ params["w3"] + params["b3"]
    ff = (a * g) @ params["wff"] + params["bff"]
    return h1 + ff


# ------------------------------------ main ----------------------------------------
if __name__ == "__main__":
    key = jax.random.PRNGKey(0)
    keys = jax.random.split(key, 12)

    x = jax.random.normal(keys[0], (B, T, D), jnp.float32)

    # rotary_pe [B, T, HD//2, 2] = (cos, sin) of theta_i * t
    inv_freq = 1.0 / (10000.0 ** (jnp.arange(0, HD, 2, dtype=jnp.float32) / HD))
    ang = jnp.arange(T, dtype=jnp.float32)[:, None] * inv_freq[None, :]   # (T, HD//2)
    rotary_pe = jnp.broadcast_to(
        jnp.stack([jnp.cos(ang), jnp.sin(ang)], -1)[None], (B, T, HD // 2, 2)
    ).astype(jnp.float32)

    scale = 0.05
    params = {
        "ln1_w": jnp.ones((D,), jnp.float32),
        "ln1_b": jnp.zeros((D,), jnp.float32),
        # weights stored already transposed for (x @ W) use: (in, out)
        "wqkv": scale * jax.random.normal(keys[1], (D, 3 * D), jnp.float32),
        "bqkv": scale * jax.random.normal(keys[2], (3 * D,), jnp.float32),
        "wout": scale * jax.random.normal(keys[3], (D, D), jnp.float32),
        "bout": scale * jax.random.normal(keys[4], (D,), jnp.float32),
        "ln2_w": jnp.ones((D,), jnp.float32),
        "ln2_b": jnp.zeros((D,), jnp.float32),
        "w1": scale * jax.random.normal(keys[5], (D, HF), jnp.float32),
        "b1": scale * jax.random.normal(keys[6], (HF,), jnp.float32),
        "w3": scale * jax.random.normal(keys[7], (D, HF), jnp.float32),
        "b3": scale * jax.random.normal(keys[8], (HF,), jnp.float32),
        "wff": scale * jax.random.normal(keys[9], (HF, D), jnp.float32),
        "bff": scale * jax.random.normal(keys[10], (D,), jnp.float32),
    }

    # TODO(synk): use_cache / past_key_value (KV-cache concat) inference path not
    # implemented; forward matches use_cache=False, dropout=0 (eval mode).

    out = ar_block(x, rotary_pe, params)
    out = jax.block_until_ready(out)

    ref = ref_ar_block(x, rotary_pe, params)
    assert out.shape == (B, T, D)
    assert jnp.allclose(out, ref, atol=1e-3, rtol=1e-3), (
        float(jnp.max(jnp.abs(out - ref))))

    print("KERNEL_OK")
</pallas_src>

<mosaic_0001>
module attributes {stable_mosaic.version = 11 : i64} {
  func.func @ar_block_kernel(%arg0: i32, %arg1: memref<16x96xf32, #tpu.memory_space<vmem>>, %arg2: memref<32x928xf32, #tpu.memory_space<vmem>>, %arg3: memref<1x800xf32, #tpu.memory_space<vmem>>, %arg4: memref<64x48xf32, #tpu.memory_space<vmem>>, %arg5: memref<16x32xf32, #tpu.memory_space<vmem>>) attributes {dimension_semantics = [#tpu.dimension_semantics<arbitrary>], iteration_bounds = array<i64: 1>, scalar_prefetch = 0 : i64, scratch_operands = 0 : i64, tpu.core_type = #tpu.core_type<tc>, window_params = [{pipeline_mode = #tpu.pipeline_mode<synchronous>, transform_indices = @transform_0, window_bounds = array<i64: 16, 96>}, {pipeline_mode = #tpu.pipeline_mode<synchronous>, transform_indices = @transform_1, window_bounds = array<i64: 32, 928>}, {pipeline_mode = #tpu.pipeline_mode<synchronous>, transform_indices = @transform_2, window_bounds = array<i64: 1, 800>}, {pipeline_mode = #tpu.pipeline_mode<synchronous>, transform_indices = @transform_3, window_bounds = array<i64: 64, 48>}, {pipeline_mode = #tpu.pipeline_mode<synchronous>, transform_indices = @transform_4, window_bounds = array<i64: 16, 32>}]} {
    %c0 = arith.constant 0 : index
    %c0_0 = arith.constant 0 : index
    %0 = vector.load %arg1[%c0, %c0_0] : memref<16x96xf32, #tpu.memory_space<vmem>>, vector<16x96xf32>
    %1 = vector.extract_strided_slice %0 {offsets = [0, 0], sizes = [16, 32], strides = [1, 1]} : vector<16x96xf32> to vector<16x32xf32>
    %2 = vector.extract_strided_slice %0 {offsets = [0, 32], sizes = [16, 32], strides = [1, 1]} : vector<16x96xf32> to vector<16x32xf32>
    %3 = vector.extract_strided_slice %0 {offsets = [0, 64], sizes = [16, 32], strides = [1, 1]} : vector<16x96xf32> to vector<16x32xf32>
    %c0_1 = arith.constant 0 : index
    %c0_2 = arith.constant 0 : index
    %4 = vector.load %arg4[%c0_1, %c0_2] : memref<64x48xf32, #tpu.memory_space<vmem>>, vector<64x32xf32>
    %c0_3 = arith.constant 0 : index
    %c32 = arith.constant 32 : index
    %5 = vector.load %arg4[%c0_3, %c32] : memref<64x48xf32, #tpu.memory_space<vmem>>, vector<64x16xf32>
    %c0_4 = arith.constant 0 : index
    %c0_5 = arith.constant 0 : index
    %6 = vector.load %arg3[%c0_4, %c0_5] : memref<1x800xf32, #tpu.memory_space<vmem>>, vector<1x32xf32>
    %c0_6 = arith.constant 0 : index
    %c32_7 = arith.constant 32 : index
    %7 = vector.load %arg3[%c0_6, %c32_7] : memref<1x800xf32, #tpu.memory_space<vmem>>, vector<1x32xf32>
    %cst = arith.constant dense<0.000000e+00> : vector<16xf32>
    %8 = vector.multi_reduction <add>, %1, %cst [1] : vector<16x32xf32> to vector<16xf32>
    %9 = vector.shape_cast %8 : vector<16xf32> to vector<16x1xf32>
    %cst_8 = arith.constant 3.200000e+01 : f32
    %10 = vector.broadcast %cst_8 : f32 to vector<16x1xf32>
    %11 = arith.divf %9, %10 : vector<16x1xf32>
    %12 = vector.broadcast %11 : vector<16x1xf32> to vector<16x32xf32>
    %13 = arith.subf %1, %12 : vector<16x32xf32>
    %14 = arith.mulf %13, %13 : vector<16x32xf32>
    %cst_9 = arith.constant dense<0.000000e+00> : vector<16xf32>
    %15 = vector.multi_reduction <add>, %14, %cst_9 [1] : vector<16x32xf32> to vector<16xf32>
    %16 = vector.shape_cast %15 : vector<16xf32> to vector<16x1xf32>
    %cst_10 = arith.constant 3.200000e+01 : f32
    %17 = vector.broadcast %cst_10 : f32 to vector<16x1xf32>
    %18 = arith.divf %16, %17 : vector<16x1xf32>
    %19 = vector.broadcast %11 : vector<16x1xf32> to vector<16x32xf32>
    %20 = arith.subf %1, %19 : vector<16x32xf32>
    %cst_11 = arith.constant 9.99999974E-6 : f32
    %21 = vector.broadcast %cst_11 : f32 to vector<16x1xf32>
    %22 = arith.addf %18, %21 : vector<16x1xf32>
    %23 = math.rsqrt %22 : vector<16x1xf32>
    %24 = vector.broadcast %23 : vector<16x1xf32> to vector<16x32xf32>
    %25 = arith.mulf %20, %24 : vector<16x32xf32>
    %26 = vector.broadcast %6 : vector<1x32xf32> to vector<16x32xf32>
    %27 = arith.mulf %25, %26 : vector<16x32xf32>
    %28 = vector.broadcast %7 : vector<1x32xf32> to vector<16x32xf32>
    %29 = arith.addf %27, %28 : vector<16x32xf32>
    %c0_12 = arith.constant 0 : index
    %c0_13 = arith.constant 0 : index
    %30 = vector.load %arg2[%c0_12, %c0_13] : memref<32x928xf32, #tpu.memory_space<vmem>>, vector<32x96xf32>
    %cst_14 = arith.constant dense<0.000000e+00> : vector<16x96xf32>
    %31 = tpu.matmul %29, %30, %cst_14 {dimension_numbers = #tpu.dot_dimension_numbers<[1], [0], [0], [1], [0, 0, 1, 1], [], []>} : vector<16x32xf32>, vector<32x96xf32>, vector<16x96xf32> -> vector<16x96xf32>
    %c0_15 = arith.constant 0 : index
    %c128 = arith.constant 128 : index
    %32 = vector.load %arg3[%c0_15, %c128] : memref<1x800xf32, #tpu.memory_space<vmem>>, vector<1x96xf32>
    %33 = vector.broadcast %32 : vector<1x96xf32> to vector<16x96xf32>
    %34 = arith.addf %31, %33 : vector<16x96xf32>
    %35 = vector.extract_strided_slice %34 {offsets = [0, 0], sizes = [16, 32], strides = [1, 1]} : vector<16x96xf32> to vector<16x32xf32>
    %36 = vector.extract_strided_slice %34 {offsets = [0, 32], sizes = [16, 32], strides = [1, 1]} : vector<16x96xf32> to vector<16x32xf32>
    %37 = vector.extract_strided_slice %34 {offsets = [0, 64], sizes = [16, 32], strides = [1, 1]} : vector<16x96xf32> to vector<16x32xf32>
    %c0_16 = arith.constant 0 : index
    %c896 = arith.constant 896 : index
    %38 = vector.load %arg2[%c0_16, %c896] : memref<32x928xf32, #tpu.memory_space<vmem>>, vector<32x32xf32>
    %39 = tpu.concatenate %35, %36 in 0 : vector<16x32xf32>, vector<16x32xf32> -> vector<32x32xf32>
    %40 = tpu.concatenate %2, %2 in 0 : vector<16x32xf32>, vector<16x32xf32> -> vector<32x32xf32>
    %41 = tpu.concatenate %3, %3 in 0 : vector<16x32xf32>, vector<16x32xf32> -> vector<32x32xf32>
    %42 = arith.mulf %39, %40 : vector<32x32xf32>
    %cst_17 = arith.constant dense<0.000000e+00> : vector<32x32xf32>
    %43 = tpu.matmul %39, %38, %cst_17 {dimension_numbers = #tpu.dot_dimension_numbers<[1], [0], [0], [1], [0, 0, 1, 1], [], []>} : vector<32x32xf32>, vector<32x32xf32>, vector<32x32xf32> -> vector<32x32xf32>
    %44 = arith.mulf %43, %41 : vector<32x32xf32>
    %45 = arith.addf %42, %44 : vector<32x32xf32>
    %46 = vector.extract_strided_slice %45 {offsets = [0, 0], sizes = [16, 32], strides = [1, 1]} : vector<32x32xf32> to vector<16x32xf32>
    %47 = vector.extract_strided_slice %45 {offsets = [16, 0], sizes = [16, 32], strides = [1, 1]} : vector<32x32xf32> to vector<16x32xf32>
    %48 = vector.extract_strided_slice %46 {offsets = [0, 0], sizes = [8, 32], strides = [1, 1]} : vector<16x32xf32> to vector<8x32xf32>
    %49 = vector.extract_strided_slice %46 {offsets = [0, 0], sizes = [8, 32], strides = [1, 1]} : vector<16x32xf32> to vector<8x32xf32>
    %50 = vector.extract_strided_slice %46 {offsets = [0, 0], sizes = [8, 32], strides = [1, 1]} : vector<16x32xf32> to vector<8x32xf32>
    %51 = vector.extract_strided_slice %46 {offsets = [0, 0], sizes = [8, 32], strides = [1, 1]} : vector<16x32xf32> to vector<8x32xf32>
    %52 = vector.extract_strided_slice %46 {offsets = [8, 0], sizes = [8, 32], strides = [1, 1]} : vector<16x32xf32> to vector<8x32xf32>
    %53 = vector.extract_strided_slice %46 {offsets = [8, 0], sizes = [8, 32], strides = [1, 1]} : vector<16x32xf32> to vector<8x32xf32>
    %54 = vector.extract_strided_slice %46 {offsets = [8, 0], sizes = [8, 32], strides = [1, 1]} : vector<16x32xf32> to vector<8x32xf32>
    %55 = vector.extract_strided_slice %46 {offsets = [8, 0], sizes = [8, 32], strides = [1, 1]} : vector<16x32xf32> to vector<8x32xf32>
    %56 = tpu.concatenate %48, %49, %50, %51, %52, %53, %54, %55 in 0 : vector<8x32xf32>, vector<8x32xf32>, vector<8x32xf32>, vector<8x32xf32>, vector<8x32xf32>, vector<8x32xf32>, vector<8x32xf32>, vector<8x32xf32> -> vector<64x32xf32>
    %57 = arith.mulf %56, %4 : vector<64x32xf32>
    %cst_18 = arith.constant dense<0.000000e+00> : vector<64x16xf32>
    %58 = tpu.matmul %57, %47, %cst_18 {dimension_numbers = #tpu.dot_dimension_numbers<[1], [1], [0], [0], [0, 0, 1, 0], [], []>} : vector<64x32xf32>, vector<16x32xf32>, vector<64x16xf32> -> vector<64x16xf32>
    %cst_19 = arith.constant 0.353553385 : f32
    %59 = vector.broadcast %cst_19 : f32 to vector<64x16xf32>
    %60 = arith.mulf %58, %59 : vector<64x16xf32>
    %61 = arith.addf %60, %5 : vector<64x16xf32>
    %cst_20 = arith.constant dense<0xFF800000> : vector<64xf32>
    %62 = vector.multi_reduction <maximumf>, %61, %cst_20 [1] : vector<64x16xf32> to vector<64xf32>
    %63 = vector.shape_cast %62 : vector<64xf32> to vector<64x1xf32>
    %64 = vector.broadcast %63 : vector<64x1xf32> to vector<64x16xf32>
    %65 = arith.subf %61, %64 : vector<64x16xf32>
    %66 = math.exp %65 : vector<64x16xf32>
    %cst_21 = arith.constant dense<0.000000e+00> : vector<64xf32>
    %67 = vector.multi_reduction <add>, %66, %cst_21 [1] : vector<64x16xf32> to vector<64xf32>
    %68 = vector.shape_cast %67 : vector<64xf32> to vector<64x1xf32>
    %69 = tpu.reciprocal %68 {approx = true} : vector<64x1xf32> -> vector<64x1xf32>
    %70 = vector.broadcast %69 : vector<64x1xf32> to vector<64x16xf32>
    %71 = arith.mulf %66, %70 : vector<64x16xf32>
    %cst_22 = arith.constant dense<0.000000e+00> : vector<64x32xf32>
    %72 = tpu.matmul %71, %37, %cst_22 {dimension_numbers = #tpu.dot_dimension_numbers<[1], [0], [0], [1], [0, 0, 1, 1], [], []>} : vector<64x16xf32>, vector<16x32xf32>, vector<64x32xf32> -> vector<64x32xf32>
    %73 = arith.mulf %72, %4 : vector<64x32xf32>
    %74 = vector.extract_strided_slice %73 {offsets = [0, 0], sizes = [8, 32], strides = [1, 1]} : vector<64x32xf32> to vector<8x32xf32>
    %75 = vector.extract_strided_slice %73 {offsets = [8, 0], sizes = [8, 32], strides = [1, 1]} : vector<64x32xf32> to vector<8x32xf32>
    %76 = arith.addf %74, %75 : vector<8x32xf32>
    %77 = vector.extract_strided_slice %73 {offsets = [16, 0], sizes = [8, 32], strides = [1, 1]} : vector<64x32xf32> to vector<8x32xf32>
    %78 = arith.addf %76, %77 : vector<8x32xf32>
    %79 = vector.extract_strided_slice %73 {offsets = [24, 0], sizes = [8, 32], strides = [1, 1]} : vector<64x32xf32> to vector<8x32xf32>
    %80 = arith.addf %78, %79 : vector<8x32xf32>
    %81 = vector.extract_strided_slice %73 {offsets = [32, 0], sizes = [8, 32], strides = [1, 1]} : vector<64x32xf32> to vector<8x32xf32>
    %82 = vector.extract_strided_slice %73 {offsets = [40, 0], sizes = [8, 32], strides = [1, 1]} : vector<64x32xf32> to vector<8x32xf32>
    %83 = arith.addf %81, %82 : vector<8x32xf32>
    %84 = vector.extract_strided_slice %73 {offsets = [48, 0], sizes = [8, 32], strides = [1, 1]} : vector<64x32xf32> to vector<8x32xf32>
    %85 = arith.addf %83, %84 : vector<8x32xf32>
    %86 = vector.extract_strided_slice %73 {offsets = [56, 0], sizes = [8, 32], strides = [1, 1]} : vector<64x32xf32> to vector<8x32xf32>
    %87 = arith.addf %85, %86 : vector<8x32xf32>
    %88 = tpu.concatenate %80, %87 in 0 : vector<8x32xf32>, vector<8x32xf32> -> vector<16x32xf32>
    %c0_23 = arith.constant 0 : index
    %c96 = arith.constant 96 : index
    %89 = vector.load %arg2[%c0_23, %c96] : memref<32x928xf32, #tpu.memory_space<vmem>>, vector<32x32xf32>
    %cst_24 = arith.constant dense<0.000000e+00> : vector<16x32xf32>
    %90 = tpu.matmul %88, %89, %cst_24 {dimension_numbers = #tpu.dot_dimension_numbers<[1], [0], [0], [1], [0, 0, 1, 1], [], []>} : vector<16x32xf32>, vector<32x32xf32>, vector<16x32xf32> -> vector<16x32xf32>
    %c0_25 = arith.constant 0 : index
    %c224 = arith.constant 224 : index
    %91 = vector.load %arg3[%c0_25, %c224] : memref<1x800xf32, #tpu.memory_space<vmem>>, vector<1x32xf32>
    %92 = vector.broadcast %91 : vector<1x32xf32> to vector<16x32xf32>
    %93 = arith.addf %90, %92 : vector<16x32xf32>
    %94 = arith.addf %1, %93 : vector<16x32xf32>
    %c0_26 = arith.constant 0 : index
    %c64 = arith.constant 64 : index
    %95 = vector.load %arg3[%c0_26, %c64] : memref<1x800xf32, #tpu.memory_space<vmem>>, vector<1x32xf32>
    %c0_27 = arith.constant 0 : index
    %c96_28 = arith.constant 96 : index
    %96 = vector.load %arg3[%c0_27, %c96_28] : memref<1x800xf32, #tpu.memory_space<vmem>>, vector<1x32xf32>
    %cst_29 = arith.constant dense<0.000000e+00> : vector<16xf32>
    %97 = vector.multi_reduction <add>, %94, %cst_29 [1] : vector<16x32xf32> to vector<16xf32>
    %98 = vector.shape_cast %97 : vector<16xf32> to vector<16x1xf32>
    %cst_30 = arith.constant 3.200000e+01 : f32
    %99 = vector.broadcast %cst_30 : f32 to vector<16x1xf32>
    %100 = arith.divf %98, %99 : vector<16x1xf32>
    %101 = vector.broadcast %100 : vector<16x1xf32> to vector<16x32xf32>
    %102 = arith.subf %94, %101 : vector<16x32xf32>
    %103 = arith.mulf %102, %102 : vector<16x32xf32>
    %cst_31 = arith.constant dense<0.000000e+00> : vector<16xf32>
    %104 = vector.multi_reduction <add>, %103, %cst_31 [1] : vector<16x32xf32> to vector<16xf32>
    %105 = vector.shape_cast %104 : vector<16xf32> to vector<16x1xf32>
    %cst_32 = arith.constant 3.200000e+01 : f32
    %106 = vector.broadcast %cst_32 : f32 to vector<16x1xf32>
    %107 = arith.divf %105, %106 : vector<16x1xf32>
    %108 = vector.broadcast %100 : vector<16x1xf32> to vector<16x32xf32>
    %109 = arith.subf %94, %108 : vector<16x32xf32>
    %cst_33 = arith.constant 9.99999974E-6 : f32
    %110 = vector.broadcast %cst_33 : f32 to vector<16x1xf32>
    %111 = arith.addf %107, %110 : vector<16x1xf32>
    %112 = math.rsqrt %111 : vector<16x1xf32>
    %113 = vector.broadcast %112 : vector<16x1xf32> to vector<16x32xf32>
    %114 = arith.mulf %109, %113 : vector<16x32xf32>
    %115 = vector.broadcast %95 : vector<1x32xf32> to vector<16x32xf32>
    %116 = arith.mulf %114, %115 : vector<16x32xf32>
    %117 = vector.broadcast %96 : vector<1x32xf32> to vector<16x32xf32>
    %118 = arith.addf %116, %117 : vector<16x32xf32>
    %c0_34 = arith.constant 0 : index
    %c128_35 = arith.constant 128 : index
    %119 = vector.load %arg2[%c0_34, %c128_35] : memref<32x928xf32, #tpu.memory_space<vmem>>, vector<32x512xf32>
    %cst_36 = arith.constant dense<0.000000e+00> : vector<16x512xf32>
    %120 = tpu.matmul %118, %119, %cst_36 {dimension_numbers = #tpu.dot_dimension_numbers<[1], [0], [0], [1], [0, 0, 1, 1], [], []>} : vector<16x32xf32>, vector<32x512xf32>, vector<16x512xf32> -> vector<16x512xf32>
    %c0_37 = arith.constant 0 : index
    %c288 = arith.constant 288 : index
    %121 = vector.load %arg3[%c0_37, %c288] : memref<1x800xf32, #tpu.memory_space<vmem>>, vector<1x512xf32>
    %122 = vector.broadcast %121 : vector<1x512xf32> to vector<16x512xf32>
    %123 = arith.addf %120, %122 : vector<16x512xf32>
    %124 = vector.extract_strided_slice %123 {offsets = [0, 0], sizes = [16, 256], strides = [1, 1]} : vector<16x512xf32> to vector<16x256xf32>
    %125 = vector.extract_strided_slice %123 {offsets = [0, 256], sizes = [16, 256], strides = [1, 1]} : vector<16x512xf32> to vector<16x256xf32>
    %126 = arith.negf %124 : vector<16x256xf32>
    %127 = math.exp %126 : vector<16x256xf32>
    %cst_38 = arith.constant 1.000000e+00 : f32
    %128 = vector.broadcast %cst_38 : f32 to vector<16x256xf32>
    %129 = arith.addf %128, %127 : vector<16x256xf32>
    %130 = arith.divf %128, %129 : vector<16x256xf32>
    %131 = arith.mulf %124, %130 : vector<16x256xf32>
    %132 = arith.mulf %131, %125 : vector<16x256xf32>
    %c0_39 = arith.constant 0 : index
    %c640 = arith.constant 640 : index
    %133 = vector.load %arg2[%c0_39, %c640] : memref<32x928xf32, #tpu.memory_space<vmem>>, vector<32x256xf32>
    %cst_40 = arith.constant dense<0.000000e+00> : vector<16x32xf32>
    %134 = tpu.matmul %132, %133, %cst_40 {dimension_numbers = #tpu.dot_dimension_numbers<[1], [1], [0], [0], [0, 0, 1, 0], [], []>} : vector<16x256xf32>, vector<32x256xf32>, vector<16x32xf32> -> vector<16x32xf32>
    %c0_41 = arith.constant 0 : index
    %c256 = arith.constant 256 : index
    %135 = vector.load %arg3[%c0_41, %c256] : memref<1x800xf32, #tpu.memory_space<vmem>>, vector<1x32xf32>
    %136 = vector.broadcast %135 : vector<1x32xf32> to vector<16x32xf32>
    %137 = arith.addf %134, %136 : vector<16x32xf32>
    %138 = arith.addf %94, %137 : vector<16x32xf32>
    %c0_42 = arith.constant 0 : index
    %c0_43 = arith.constant 0 : index
    %139 = vector.load %arg5[%c0_42, %c0_43] : memref<16x32xf32, #tpu.memory_space<vmem>>, vector<16x32xf32>
    tpu.vector_store %arg5[%c0_42, %c0_43], %138 {strides = array<i32>} : memref<16x32xf32, #tpu.memory_space<vmem>>, vector<16x32xf32>,
    return
  }
  func.func @transform_0(%arg0: i32) -> (i32, i32) {
    %c0_i32 = arith.constant 0 : i32
    %c0_i32_0 = arith.constant 0 : i32
    %c0_i32_1 = arith.constant 0 : i32
    return %c0_i32, %c0_i32_0 : i32, i32
  }
  func.func @transform_1(%arg0: i32) -> (i32, i32) {
    %c0_i32 = arith.constant 0 : i32
    %c0_i32_0 = arith.constant 0 : i32
    %c0_i32_1 = arith.constant 0 : i32
    return %c0_i32, %c0_i32_0 : i32, i32
  }
  func.func @transform_2(%arg0: i32) -> (i32, i32) {
    %c0_i32 = arith.constant 0 : i32
    %c0_i32_0 = arith.constant 0 : i32
    %c0_i32_1 = arith.constant 0 : i32
    return %c0_i32, %c0_i32_0 : i32, i32
  }
  func.func @transform_3(%arg0: i32) -> (i32, i32) {
    %c0_i32 = arith.constant 0 : i32
    %c0_i32_0 = arith.constant 0 : i32
    %c0_i32_1 = arith.constant 0 : i32
    return %c0_i32, %c0_i32_0 : i32, i32
  }
  func.func @transform_4(%arg0: i32) -> (i32, i32) {
    %c0_i32 = arith.constant 0 : i32
    %c0_i32_0 = arith.constant 0 : i32
    %c0_i32_1 = arith.constant 0 : i32
    return %c0_i32, %c0_i32_0 : i32, i32
  }
}

</mosaic_0001>

<bundles_post_ra>
// kernel: tpu_custom_call.1
= control target key start
LH: loop header
LB: loop body
LE: loop exit
PB: predicated region body
PF: predicated region fallthrough
CT: control target
= control target key end

     0   :  { %9 = vsyncpa [#allocation3], 0  ;;  %s1873_s0 = inlined_call_operand.vmem [shape: f32[16,96], index: 0, kind: input, shape index: {}]   ;;  %s1874_s1 = inlined_call_operand.hbm [shape: f32[32,928], index: 1, kind: input, shape index: {}]   ;;  %s1875_s2 = inlined_call_operand.vmem [shape: f32[1,800], index: 2, kind: input, shape index: {}]   ;;  %s1876_s3 = inlined_call_operand.vmem [shape: f32[64,48], index: 3, kind: input, shape index: {}]   ;;  %s1877_s4 = inlined_call_operand.hbm [shape: f32[16,32], index: 4, kind: output, shape index: {}]  }
   0x1   :  { %10 = vsyncpa [#allocation4], 0  ;;  %s1565_s15 = smov [#allocation2]   ;;  %s1517_s19 = scalar_lea.hbm %s1874_s1, 4096 }
   0x2   :  { %s18_s16 = sshll.u32 %s1565_s15, 4  ;;  %p1518_p0 = scmp.ne.s32.totalorder %s1874_s1, %s1517_s19  ;;  %s19_s16 = int_to_ptr.vmem [resolvable:$true] %s18_s16 }
   0x3   :  { %p1521_p1 = scmp.lt.u32.totalorder %s1517_s19, %s1874_s1 }
   0x5   :  { %p1523_p2 = pnand %p1521_p1, %p1518_p0 }
   0x7   :  { %1526 = shalt.err (!%p1523_p2)
}
   0x8   :  { %s1527_s24 = scalar_lea.vmem %s19_s16, 4096  ;;  %p1532_p4 = scmp.lt.s32.totalorder %s19_s16, %s19_s16 }
   0x9   :  { %p1528_p3 = scmp.ne.s32.totalorder %s19_s16, %s1527_s24  ;;  %p1533_p5 = scmp.lt.s32.totalorder %s1527_s24, %s1527_s24 }
   0xb   :  { %p1534_p6 = por %p1533_p5, %p1532_p4 }
   0xd   :  { %p1535_p7 = pnand %p1534_p6, %p1528_p3 }
   0xf   :  { %1538 = shalt.err (!%p1535_p7)
}
  0x10   :  { %s1566_s25 = smov 1024   ;;  %s1567_s26 = smov 64  }
  0x11   :  { %24 = dma.hbm_to_vmem [thread:$0]  %s1874_s1, 4096, %s19_s16, [#allocation3], %s1566_s25, %s1566_s25, %s1567_s26  }
  0x12   :  { %1561 = dma.done.wait [#allocation3], 4096  }
  0x13   :  { %1562 = vsyncadd [#allocation3], 4294963200  ;;  %vm43_vm0 = vcmask 261120   ;;  %v1615_v0 = vld [vmem:[%s1873_s0] sm:$0xff]  ;;  %v1620_v1 = vld [vmem:[%s1873_s0 + $0x8] sm:$0xff]  ;;  %s1568_s8 = smov 96  }
  0x14   :  { %v44_v2 = vsel %vm43_vm0, %v1615_v0, 0.0  ;;  %v47_v3 = vsel %vm43_vm0, %v1620_v1, 0.0  ;;  %v1629_v4 = vld [vmem:[%s1875_s2] ss:$0 sm:$0xff]  ;;  %v176_v22 = vld [vmem:[#allocation2 + $0x38] sm:$0xff]  ;;  %v1685_v48 = vld [vmem:[%s1876_s3 + $0x8] sm:$0xff] }
  0x15   :  { %45 = vadd.xlane.f32.xlu0 %v44_v2  ;;  %v1641_v15 = vld [vmem:[#allocation2] sm:$0xff]  ;;  %v177_v23 = vld [vmem:[#allocation2 + $0x78] sm:$0xff]  ;;  %v1706_v51 = vld [vmem:[%s1876_s3 + $0x10] sm:$0xff]  ;;  %vm498_vm2 = vcmask 130048   ;;  %vm922_vm3 = vcmask 785408   ;;  %s1571_s30 = smov [#allocation5]  }
  0x16   :  { %v1643_v16 = vld [vmem:[#allocation2 + $0x40] sm:$0xff]  ;;  %v1387_v24 = vpack.c.bf16 %v177_v23, %v176_v22  ;;  %v178_v40 = vld [vmem:[#allocation2 + $0xb8] sm:$0xff]  ;;  %v1713_v52 = vld [vmem:[%s1876_s3 + $0x28] sm:$0xff]  ;;  %s1222_s5 = sshll.u32 %s1571_s30, 4  ;;  %s1223_s5 = int_to_ptr.vmem [resolvable:$true] %s1222_s5 }
  0x17   :  { %v1451_v17 = vpack.i.bf16 %v1643_v16, %v1641_v15  ;;  %v1379_v18 = vpack.c.bf16 %v1643_v16, %v1641_v15  ;;  %v1649_v19 = vld [vmem:[#allocation2 + $0x80] sm:$0xff]  ;;  %v179_v41 = vld [vmem:[#allocation2 + $0xf8] sm:$0xff]  ;;  %v1734_v55 = vld [vmem:[%s1876_s3 + $0x30] sm:$0xff]  ;;  %s1539_s6 = scalar_lea.vmem %s1223_s5, 256  ;;  %p1544_p9 = scmp.lt.s32.totalorder %s1223_s5, %s1223_s5 }
  0x18   :  { %v1651_v20 = vld [vmem:[#allocation2 + $0xc0] sm:$0xff]  ;;  %1388 = vmatprep.subr.bf16.mxu1 %v1387_v24  ;;  %v1391_v42 = vpack.c.bf16 %v179_v41, %v178_v40  ;;  %v1699_v50 = vld [vmem:[%s1876_s3 + $0x18] sm:$0xff]  ;;  %vm1396_vm1 = vmpackc.low %vm43_vm0, %vm43_vm0  ;;  %p1540_p8 = scmp.ne.s32.totalorder %s1223_s5, %s1539_s6  ;;  %p1545_p10 = scmp.lt.s32.totalorder %s1539_s6, %s1539_s6 }
  0x19   :  { %48 = vadd.xlane.f32.xlu0 %v47_v3  ;;  %1380 = vmatprep.subr.bf16.mxu0 %v1379_v18  ;;  %v1383_v21 = vpack.c.bf16 %v1651_v20, %v1649_v19  ;;  %v1662_v43 = vld [vmem:[%s1875_s2 + $0x1] ss:$0 sm:$0xff]  ;;  %v1727_v54 = vld [vmem:[%s1876_s3 + $0x38] sm:$0xff] }
  0x1a   :  { %1382 = vmatpush3.bf16.msra.mxu0 %v1379_v18  ;;  %1390 = vmatpush3.bf16.msra.mxu1 %v1387_v24  ;;  %v1692_v49 = vld [vmem:[%s1876_s3] sm:$0xff]  ;;  %p1546_p11 = por %p1545_p10, %p1544_p9 }
  0x1b   :  { %1384 = vmatprep.subr.bf16.mxu0 %v1383_v21  ;;  %1392 = vmatprep.subr.bf16.mxu1 %v1391_v42  ;;  %v1720_v53 = vld [vmem:[%s1876_s3 + $0x20] sm:$0xff]  ;;  %s1569_s3 = smov 32  }
  0x1c   :  { %p1547_p12 = pnand %p1546_p11, %p1540_p8 }
  0x1e   :  { %1386 = vmatpush3.bf16.msra.mxu0 %v1383_v21  ;;  %1394 = vmatpush3.bf16.msra.mxu1 %v1391_v42 }
  0x2f   :  { %79 = vrot.lane.b32.xlu0 %v1629_v4, %s1568_s8 }
  0x33   :  { %192 = vrot.lane.b32.xlu0 %v1620_v1, %s1568_s8 }
  0x37   :  { %295 = vrot.lane.b32.xlu0 %v1620_v1, %s1567_s26 }
  0x3b   :  { %468 = vrot.lane.b32.xlu0 %v1685_v48, %s1568_s8 }
  0x3f   :  { %472 = vrot.lane.b32.xlu0 %v1699_v50, %s1568_s8 }
  0x43   :  { %476 = vrot.lane.b32.xlu0 %v1713_v52, %s1568_s8 }
  0x47   :  { %480 = vrot.lane.b32.xlu0 %v1727_v54, %s1568_s8 }
  0xa2   :  { %v46_v5 = vpop.xlane.xlu0 %45 }
  0xa3   :  { %v51_v6 = vmul.f32 0.03125, %v46_v5 }
  0xa5   :  { %v53_v7 = vsub.f32 %v1615_v0, %v51_v6 }
  0xa6   :  { %v49_v8 = vpop.xlane.xlu0 %48 }
  0xa7   :  { %v52_v9 = vmul.f32 0.03125, %v49_v8  ;;  %v55_v10 = vmul.f32 %v53_v7, %v53_v7 }
  0xa9   :  { %v54_v11 = vsub.f32 %v1620_v1, %v52_v9  ;;  %v57_v12 = vsel %vm43_vm0, %v55_v10, 0.0 }
  0xaa   :  { %58 = vadd.xlane.f32.xlu1 %v57_v12  ;;  %v80_v33 = vpop.permute.xlu0 %79 }
  0xab   :  { %v56_v13 = vmul.f32 %v54_v11, %v54_v11 }
  0xad   :  { %v60_v14 = vsel %vm43_vm0, %v56_v13, 0.0 }
  0xae   :  { %61 = vadd.xlane.f32.xlu1 %v60_v14  ;;  %v193_v60 = vpop.permute.xlu0 %192 }
  0xb2   :  { %v296_v61 = vpop.permute.xlu0 %295 }
 0x137   :  { %v59_v25 = vpop.xlane.xlu1 %58 }
 0x138   :  { %v63_v26 = vmul.f32 0.03125, %v59_v25 }
 0x13a   :  { %v65_v27 = vadd.f32 1e-05, %v63_v26 }
 0x13b   :  { %v62_v28 = vpop.xlane.xlu1 %61 }
 0x13c   :  { %1461 = vrsqrt.f32 %v65_v27  ;;  %v64_v29 = vmul.f32 0.03125, %v62_v28 }
 0x13e   :  { %v66_v30 = vadd.f32 1e-05, %v64_v29 }
 0x140   :  { %1463 = vrsqrt.f32 %v66_v30 }
 0x146   :  { %v1462_v31 = vpop.eup %1461 }
 0x147   :  { %v69_v32 = vmul.f32 %v1462_v31, %v53_v7 }
 0x149   :  { %v77_v34 = vmul.f32 %v1629_v4, %v69_v32  ;;  %v469_v32 = vpop.permute.xlu0 %468 }
 0x14a   :  { %v1464_v35 = vpop.eup %1463 }
 0x14b   :  { %v70_v36 = vmul.f32 %v1464_v35, %v54_v11  ;;  %v82_v37 = vadd.f32 %v80_v33, %v77_v34 }
 0x14d   :  { %v78_v38 = vmul.f32 %v1629_v4, %v70_v36  ;;  %1319 = vmatprep.mubr.msk.f32.mxu0 %vm43_vm0, %v82_v37 }
 0x14f   :  { %v83_v39 = vadd.f32 %v80_v33, %v78_v38 }
 0x151   :  { %1320 = vmatmul.mubr.msk.f32.vlgmr.msra.gmra.mrb[0].mxu0 %vm43_vm0, %v83_v39  ;;  %v473_v39 = vpop.permute.xlu0 %472 }
 0x224   :  { %v1321_v44 = vpop.f32.mrb[0].mxu0 }
 0x225   :  { %v167_v45 = vpop.f32.mrb[1].mxu0  ;;  %v1668_v47 = vadd.f32 %v1321_v44, %v1662_v43 }
 0x226   :  { %v1665_v46 = vadd.f32 %v1662_v43, %v167_v45 }
 0x227   :  { %v197_v2 = vmul.f32 %v193_v60, %v1668_v47 }
 0x228   :  { %182 = vrot.lane.b32.xlu1 %v1665_v46, %s1568_s8  ;;  %1330 = vmatprep.mubr.msk.f32.mxu1 %vm43_vm0, %v1665_v46 }
 0x229   :  { %1331 = vmatmul.mubr.msk.f32.vlgmr.msra.gmra.mrb[0].mxu1 %vm43_vm0, %v1668_v47 }
 0x22c   :  { %184 = vrot.lane.b32.xlu1 %v1668_v47, %s1568_s8 }
 0x230   :  { %190 = vrot.lane.b32.xlu1 %v1615_v0, %s1568_s8 }
 0x234   :  { %293 = vrot.lane.b32.xlu1 %v1615_v0, %s1567_s26 }
 0x238   :  { %466 = vrot.lane.b32.xlu1 %v1692_v49, %s1568_s8 }
 0x23c   :  { %470 = vrot.lane.b32.xlu1 %v1706_v51, %s1568_s8 }
 0x240   :  { %474 = vrot.lane.b32.xlu1 %v1720_v53, %s1568_s8 }
 0x244   :  { %478 = vrot.lane.b32.xlu1 %v1734_v55, %s1568_s8 }
 0x29a   :  { %v183_v56 = vpop.permute.xlu1 %182 }
 0x29b   :  { %1333 = vmatprep.mubr.msk.f32.mxu1 %vm43_vm0, %v183_v56 }
 0x29e   :  { %v185_v57 = vpop.permute.xlu1 %184 }
 0x29f   :  { %1334 = vmatmul.mubr.msk.f32.gmra.mrb[2].mxu1 %vm43_vm0, %v185_v57  ;;  %v199_v12 = vmul.f32 %v193_v60, %v185_v57 }
 0x2a2   :  { %v191_v58 = vpop.permute.xlu1 %190 }
 0x2a3   :  { %v198_v59 = vmul.f32 %v191_v58, %v183_v56  ;;  %v196_v6 = vmul.f32 %v191_v58, %v1665_v46 }
 0x2a6   :  { %v294_v62 = vpop.permute.xlu1 %293 }
 0x2aa   :  { %v467_v31 = vpop.permute.xlu1 %466 }
 0x2ae   :  { %v471_v36 = vpop.permute.xlu1 %470 }
 0x2b2   :  { %v475_v58 = vpop.permute.xlu1 %474 }
 0x2fc   :  { %v1332_v63 = vpop.f32.mrb[0].mxu1 }
 0x2fd   :  { %v300_v3 = vmul.f32 %v1332_v63, %v296_v61  ;;  %v274_v5 = vpop.f32.mrb[1].mxu1  ;;  %v477_v63 = vpop.permute.xlu0 %476 }
 0x2fe   :  { %v299_v7 = vmul.f32 %v294_v62, %v274_v5 }
 0x2ff   :  { %v304_v8 = vadd.f32 %v300_v3, %v197_v2 }
 0x300   :  { %v303_v9 = vadd.f32 %v299_v7, %v196_v6 }
 0x301   :  { %v311_v27 = vmul.f32 %v304_v8, %v1720_v53  ;;  %v312_v28 = vmul.f32 %v304_v8, %v1713_v52  ;;  %v313_v29 = vmul.f32 %v304_v8, %v1734_v55  ;;  %v314_v30 = vmul.f32 %v304_v8, %v1727_v54 }
 0x302   :  { %v307_v10 = vmul.f32 %v303_v9, %v1692_v49  ;;  %v308_v24 = vmul.f32 %v303_v9, %v1685_v48  ;;  %v309_v25 = vmul.f32 %v303_v9, %v1706_v51  ;;  %v310_v26 = vmul.f32 %v303_v9, %v1699_v50  ;;  %v479_v9 = vpop.permute.xlu1 %478 }
 0x304   :  { %1340 = vmatprep.mubr.msk.f32.mxu0 %vm43_vm0, %v307_v10 }
 0x372   :  { %v1335_v11 = vpop.f32.mrb[2].mxu1 }
 0x373   :  { %v302_v13 = vmul.f32 %v1335_v11, %v296_v61  ;;  %v284_v14 = vpop.f32.mrb[3].mxu1 }
 0x374   :  { %v301_v18 = vmul.f32 %v294_v62, %v284_v14 }
 0x375   :  { %v306_v21 = vadd.f32 %v302_v13, %v199_v12 }
 0x376   :  { %v305_v22 = vadd.f32 %v301_v18, %v198_v59  ;;  %v481_v18 = vpop.permute.xlu0 %480 }
 0x378   :  { %v1395_v23 = vpack.c.bf16 %v306_v21, %v305_v22 }
 0x37a   :  { %1397 = vmatprep.subr.msk.bf16.mxu0 %vm1396_vm1, %v1395_v23 }
 0x37b   :  { %1400 = vmatpush3.bf16.xpose.msk.msra.mxu0 %vm1396_vm1, %v1395_v23 }
 0x382   :  { %1341 = vmatmul.mubr.msk.f32.vlgmr.msra.gmra.mrb[2].mxu0 %vm43_vm0, %v308_v24 }
 0x383   :  { %1343 = vmatprep.mubr.msk.f32.mxu0 %vm43_vm0, %v309_v25 }
 0x386   :  { %1344 = vmatmul.mubr.msk.f32.gmra.mrb[4].mxu0 %vm43_vm0, %v310_v26 }
 0x387   :  { %1346 = vmatprep.mubr.msk.f32.mxu0 %vm43_vm0, %v311_v27 }
 0x38a   :  { %1347 = vmatmul.mubr.msk.f32.gmra.mrb[6].mxu0 %vm43_vm0, %v312_v28 }
 0x38b   :  { %1349 = vmatprep.mubr.msk.f32.mxu0 %vm43_vm0, %v313_v29 }
 0x38e   :  { %1350 = vmatmul.mubr.msk.f32.gmra.mrb[8].mxu0 %vm43_vm0, %v314_v30 }
 0x455   :  { %v1342_v33 = vpop.f32.mrb[2].mxu0 }
 0x456   :  { %v451_v34 = vmul.f32 0.35355338, %v1342_v33  ;;  %v411_v35 = vpop.f32.mrb[3].mxu0 }
 0x457   :  { %v450_v37 = vmul.f32 0.35355338, %v411_v35 }
 0x458   :  { %v491_v38 = vadd.f32 %v469_v32, %v451_v34 }
 0x459   :  { %v490_v40 = vadd.f32 %v467_v31, %v450_v37  ;;  %v1345_v41 = vpop.f32.mrb[4].mxu0 }
 0x45a   :  { %v453_v42 = vmul.f32 0.35355338, %v1345_v41  ;;  %v421_v44 = vpop.f32.mrb[5].mxu0  ;;  %v502_v45 = vsel %vm498_vm2, %v491_v38, -inf }
 0x45b   :  { %v452_v56 = vmul.f32 0.35355338, %v421_v44  ;;  %503 = vmax.xlane.f32.xlu0 %v502_v45  ;;  %v499_v57 = vsel %vm498_vm2, %v490_v40, -inf }
 0x45c   :  { %500 = vmax.xlane.f32.xlu1 %v499_v57  ;;  %v493_v61 = vadd.f32 %v473_v39, %v453_v42 }
 0x45d   :  { %v492_v59 = vadd.f32 %v471_v36, %v452_v56  ;;  %v1348_v60 = vpop.f32.mrb[6].mxu0 }
 0x45e   :  { %v431_v62 = vpop.f32.mrb[7].mxu0  ;;  %v455_v2 = vmul.f32 0.35355338, %v1348_v60  ;;  %v508_v10 = vsel %vm498_vm2, %v493_v61, -inf }
 0x45f   :  { %v454_v3 = vmul.f32 0.35355338, %v431_v62  ;;  %v505_v5 = vsel %vm498_vm2, %v492_v59, -inf }
 0x460   :  { %506 = vmax.xlane.f32.xlu0 %v505_v5  ;;  %v495_v11 = vadd.f32 %v477_v63, %v455_v2 }
 0x461   :  { %v494_v6 = vadd.f32 %v475_v58, %v454_v3  ;;  %v1351_v7 = vpop.f32.mrb[8].mxu0 }
 0x462   :  { %v441_v8 = vpop.f32.mrb[9].mxu0  ;;  %v457_v12 = vmul.f32 0.35355338, %v1351_v7  ;;  %v514_v24 = vsel %vm498_vm2, %v495_v11, -inf }
 0x463   :  { %v456_v13 = vmul.f32 0.35355338, %v441_v8  ;;  %v511_v14 = vsel %vm498_vm2, %v494_v6, -inf }
 0x464   :  { %512 = vmax.xlane.f32.xlu1 %v511_v14  ;;  %509 = vmax.xlane.f32.xlu0 %v508_v10  ;;  %v497_v22 = vadd.f32 %v481_v18, %v457_v12 }
 0x465   :  { %v496_v21 = vadd.f32 %v479_v9, %v456_v13 }
 0x466   :  { %v520_v25 = vsel %vm498_vm2, %v497_v22, -inf }
 0x467   :  { %v517_v23 = vsel %vm498_vm2, %v496_v21, -inf }
 0x468   :  { %518 = vmax.xlane.f32.xlu1 %v517_v23  ;;  %515 = vmax.xlane.f32.xlu0 %v514_v24 }
 0x46c   :  { %521 = vmax.xlane.f32.xlu0 %v520_v25 }
 0x4e8   :  { %v504_v26 = vpop.xlane.xlu0 %503 }
 0x4e9   :  { %v524_v27 = vsub.f32 %v491_v38, %v504_v26  ;;  %v501_v28 = vpop.xlane.xlu1 %500 }
 0x4ea   :  { %v523_v29 = vsub.f32 %v490_v40, %v501_v28 }
 0x4eb   :  { %v533_v30 = vmul.f32 1.442695, %v524_v27 }
 0x4ec   :  { %v531_v31 = vmul.f32 1.442695, %v523_v29 }
 0x4ed   :  { %1465 = vpow2.f32 %v533_v30  ;;  %v507_v32 = vpop.xlane.xlu0 %506 }
 0x4ee   :  { %1467 = vpow2.f32 %v531_v31  ;;  %v525_v33 = vsub.f32 %v492_v59, %v507_v32 }
 0x4f0   :  { %v535_v34 = vmul.f32 1.442695, %v525_v33 }
 0x4f1   :  { %v513_v35 = vpop.xlane.xlu1 %512  ;;  %v510_v36 = vpop.xlane.xlu0 %509 }
 0x4f2   :  { %1469 = vpow2.f32 %v535_v34  ;;  %v527_v37 = vsub.f32 %v494_v6, %v513_v35  ;;  %v526_v39 = vsub.f32 %v493_v61, %v510_v36 }
 0x4f4   :  { %v539_v41 = vmul.f32 1.442695, %v527_v37  ;;  %v537_v42 = vmul.f32 1.442695, %v526_v39 }
 0x4f5   :  { %v519_v44 = vpop.xlane.xlu1 %518  ;;  %v516_v45 = vpop.xlane.xlu0 %515 }
 0x4f6   :  { %1471 = vpow2.f32 %v539_v41  ;;  %v529_v38 = vsub.f32 %v496_v21, %v519_v44  ;;  %v528_v56 = vsub.f32 %v495_v11, %v516_v45  ;;  %v1446_v21 = vpack.i.bf16 %v1668_v47, %v1665_v46 }
 0x4f7   :  { %v1768_v40 = vpop.eup %1465  ;;  %1473 = vpow2.f32 %v537_v42 }
 0x4f8   :  { %v1468_v57 = vpop.eup %1467  ;;  %v543_v58 = vmul.f32 1.442695, %v529_v38  ;;  %v541_v60 = vmul.f32 1.442695, %v528_v56  ;;  %v550_v59 = vsel %vm498_vm2, %v1768_v40, 0.0 }
 0x4f9   :  { %551 = vadd.xlane.f32.xlu0 %v550_v59  ;;  %v522_v62 = vpop.xlane.xlu0 %521  ;;  %v547_v61 = vsel %vm498_vm2, %v1468_v57, 0.0 }
 0x4fa   :  { %1475 = vpow2.f32 %v543_v58  ;;  %v530_v63 = vsub.f32 %v497_v22, %v522_v62  ;;  %548 = vadd.xlane.f32.xlu1 %v547_v61  ;;  %v1456_v22 = vpack.i.bf16 %v1651_v20, %v1649_v19 }
 0x4fb   :  { %1477 = vpow2.f32 %v541_v60 }
 0x4fc   :  { %v1470_v2 = vpop.eup %1469  ;;  %v545_v3 = vmul.f32 1.442695, %v530_v63 }
 0x4fd   :  { %v553_v5 = vsel %vm498_vm2, %v1470_v2, 0.0 }
 0x4fe   :  { %1479 = vpow2.f32 %v545_v3  ;;  %554 = vadd.xlane.f32.xlu1 %v553_v5 }
 0x500   :  { %v1472_v6 = vpop.eup %1471 }
 0x501   :  { %v1474_v7 = vpop.eup %1473  ;;  %v559_v8 = vsel %vm498_vm2, %v1472_v6, 0.0 }
 0x502   :  { %560 = vadd.xlane.f32.xlu1 %v559_v8  ;;  %v556_v9 = vsel %vm498_vm2, %v1474_v7, 0.0 }
 0x503   :  { %557 = vadd.xlane.f32.xlu0 %v556_v9 }
 0x504   :  { %v1476_v10 = vpop.eup %1475 }
 0x505   :  { %v1478_v11 = vpop.eup %1477  ;;  %v565_v12 = vsel %vm498_vm2, %v1476_v10, 0.0 }
 0x506   :  { %566 = vadd.xlane.f32.xlu1 %v565_v12  ;;  %v562_v13 = vsel %vm498_vm2, %v1478_v11, 0.0 }
 0x507   :  { %563 = vadd.xlane.f32.xlu0 %v562_v13 }
 0x508   :  { %v1480_v14 = vpop.eup %1479 }
 0x509   :  { %v568_v18 = vsel %vm498_vm2, %v1480_v14, 0.0 }
 0x50b   :  { %569 = vadd.xlane.f32.xlu0 %v568_v18 }
 0x517   :  { %1447 = vrot.lane.b32.xlu1 %v1446_v21, %s1567_s26 }
 0x51b   :  { %1457 = vrot.lane.b32.xlu1 %v1456_v22, %s1569_s3 }
 0x51f   :  { %752 = vrot.lane.b32.xlu1 %v1662_v43, %s1569_s3 }
 0x521   :  { %1452 = vrot.lane.b32.xlu0 %v1451_v17, %s1569_s3 }
 0x586   :  { %v552_v46 = vpop.xlane.xlu0 %551 }
 0x587   :  { %v549_v23 = vpop.xlane.xlu1 %548 }
 0x588   :  { %1481 = vrcp.f32 %v549_v23 }
 0x589   :  { %1483 = vrcp.f32 %v552_v46 }
 0x58b   :  { %v555_v24 = vpop.xlane.xlu1 %554 }
 0x58c   :  { %1485 = vrcp.f32 %v555_v24 }
 0x58f   :  { %v561_v47 = vpop.xlane.xlu1 %560 }
 0x590   :  { %v558_v25 = vpop.xlane.xlu0 %557 }
 0x591   :  { %1487 = vrcp.f32 %v558_v25 }
 0x592   :  { %v1482_v26 = vpop.eup %1481  ;;  %1489 = vrcp.f32 %v561_v47 }
 0x593   :  { %v567_v19 = vpop.xlane.xlu1 %566  ;;  %v579_v20 = vmul.f32 %v1482_v26, %v1468_v57  ;;  %v1484_v29 = vpop.eup %1483 }
 0x594   :  { %v564_v27 = vpop.xlane.xlu0 %563  ;;  %v580_v31 = vmul.f32 %v1484_v29, %v1768_v40  ;;  %v875_v29 = vld [vmem:[#allocation2 + $0x10] sm:$0xff] }
 0x595   :  { %1356 = vmatprep.mubr.msk.f32.mxu1 %vm498_vm2, %v579_v20  ;;  %1491 = vrcp.f32 %v564_v27 }
 0x596   :  { %1493 = vrcp.f32 %v567_v19  ;;  %v1486_v30 = vpop.eup %1485 }
 0x597   :  { %v1448_v15 = vpop.permute.xlu1 %1447  ;;  %v581_v33 = vmul.f32 %v1486_v30, %v1470_v2  ;;  %v879_v30 = vld [vmem:[#allocation2 + $0x50] sm:$0xff] }
 0x598   :  { %v1450_v16 = vunpack.i.h.bf16 %v1448_v15  ;;  %v1449_v17 = vunpack.i.l.bf16 %v1448_v15  ;;  %v570_v28 = vpop.xlane.xlu0 %569 }
 0x599   :  { %1495 = vrcp.f32 %v570_v28 }
 0x59a   :  { %v1401_v43 = vpack.c.bf16 %v1450_v16, %v1449_v17 }
 0x59b   :  { %v1488_v32 = vpop.eup %1487  ;;  %v1458_v58 = vpop.permute.xlu1 %1457 }
 0x59c   :  { %1402 = vmatprep.subr.bf16.mxu1 %v1401_v43  ;;  %v1490_v34 = vpop.eup %1489  ;;  %v582_v35 = vmul.f32 %v1488_v32, %v1474_v7  ;;  %v1453_v38 = vpop.permute.xlu0 %1452  ;;  %v1460_v60 = vunpack.i.h.bf16 %v1458_v58  ;;  %v1459_v59 = vunpack.i.l.bf16 %v1458_v58  ;;  %v1413_v32 = vpack.c.bf16 %v879_v30, %v875_v29  ;;  %v886_v58 = vld [vmem:[#allocation2 + $0xc8] sm:$0xff] }
 0x59d   :  { %1404 = vmatpush3.bf16.msra.mxu1 %v1401_v43  ;;  %v583_v37 = vmul.f32 %v1490_v34, %v1472_v6  ;;  %v1455_v56 = vunpack.i.h.bf16 %v1453_v38  ;;  %v1454_v40 = vunpack.i.l.bf16 %v1453_v38  ;;  %v877_v34 = vld [vmem:[#allocation2 + $0x20] sm:$0xff]  ;;  %v1127_v30 = vld [vmem:[#allocation2 + $0xa8] sm:$0xff] }
 0x59e   :  { %v1409_v62 = vpack.c.bf16 %v1460_v60, %v1459_v59  ;;  %1414 = vmatprep.subr.bf16.mxu1 %v1413_v32  ;;  %v885_v38 = vld [vmem:[#allocation2 + $0xa0] sm:$0xff] }
 0x59f   :  { %v1492_v36 = vpop.eup %1491  ;;  %v1405_v57 = vpack.c.bf16 %v1455_v56, %v1454_v40  ;;  %v889_v40 = vld [vmem:[#allocation2 + $0xe0] sm:$0xff] }
 0x5a0   :  { %1357 = vmatmul.mubr.msk.f32.vlgmr.msra.gmra.mrb[4].mxu1 %vm498_vm2, %v580_v31  ;;  %v1494_v39 = vpop.eup %1493  ;;  %v584_v41 = vmul.f32 %v1492_v36, %v1478_v11  ;;  %v874_v31 = vld [vmem:[#allocation2 + $0x8] sm:$0xff]  ;;  %v1425_v60 = vpack.c.bf16 %v889_v40, %v885_v38 }
 0x5a1   :  { %1359 = vmatprep.mubr.msk.f32.mxu1 %vm498_vm2, %v581_v33  ;;  %v585_v44 = vmul.f32 %v1494_v39, %v1476_v10  ;;  %1406 = vmatprep.subr.bf16.mxu0 %v1405_v57  ;;  %v878_v33 = vld [vmem:[#allocation2 + $0x48] sm:$0xff]  ;;  %v876_v39 = vld [vmem:[#allocation2 + $0x18] sm:$0xff] }
 0x5a2   :  { %1408 = vmatpush3.bf16.msra.mxu0 %v1405_v57  ;;  %v1415_v36 = vpack.c.bf16 %v878_v33, %v874_v31  ;;  %v882_v57 = vld [vmem:[#allocation2 + $0x88] sm:$0xff] }
 0x5a3   :  { %v1496_v42 = vpop.eup %1495  ;;  %1410 = vmatprep.subr.bf16.mxu0 %v1409_v62  ;;  %v1419_v59 = vpack.c.bf16 %v886_v58, %v882_v57  ;;  %v1129_v31 = vld [vmem:[#allocation2 + $0xe8] sm:$0xff] }
 0x5a4   :  { %1360 = vmatmul.mubr.msk.f32.gmra.mrb[6].mxu1 %vm498_vm2, %v582_v35  ;;  %v586_v45 = vmul.f32 %v1496_v42, %v1480_v14  ;;  %v881_v35 = vld [vmem:[#allocation2 + $0x60] sm:$0xff]  ;;  %v1435_v32 = vpack.c.bf16 %v1129_v31, %v1127_v30 }
 0x5a5   :  { %1362 = vmatprep.mubr.msk.f32.mxu1 %vm498_vm2, %v583_v37  ;;  %v1421_v37 = vpack.c.bf16 %v881_v35, %v877_v34  ;;  %1416 = vmatpush1.bf16.msra.mxu1 %v1415_v36 }
 0x5a6   :  { %1412 = vmatpush3.bf16.msra.mxu0 %v1409_v62  ;;  %v884_v62 = vld [vmem:[#allocation2 + $0x98] sm:$0xff] }
 0x5a7   :  { %1422 = vmatprep.subr.bf16.mxu0 %v1421_v37 }
 0x5a8   :  { %1363 = vmatmul.mubr.msk.f32.gmra.mrb[8].mxu1 %vm498_vm2, %v584_v41  ;;  %v880_v41 = vld [vmem:[#allocation2 + $0x58] sm:$0xff] }
 0x5a9   :  { %1365 = vmatprep.mubr.msk.f32.mxu1 %vm498_vm2, %v585_v44  ;;  %v1423_v42 = vpack.c.bf16 %v880_v41, %v876_v39  ;;  %v883_v44 = vld [vmem:[#allocation2 + $0x90] sm:$0xff] }
 0x5ac   :  { %1366 = vmatmul.mubr.msk.f32.gmra.mrb[10].mxu1 %vm498_vm2, %v586_v45  ;;  %v887_v45 = vld [vmem:[#allocation2 + $0xd0] sm:$0xff] }
 0x5ad   :  { %v1417_v56 = vpack.c.bf16 %v887_v45, %v883_v44 }
 0x5af   :  { %1418 = vmatprep.subr.bf16.mxu1 %v1417_v56 }
 0x5b0   :  { %1420 = vmatpush1.bf16.msra.mxu1 %v1419_v59 }
 0x673   :  { %v1358_v61 = vpop.f32.mrb[4].mxu1 }
 0x674   :  { %v723_v63 = vmul.f32 %v1358_v61, %v1685_v48  ;;  %v683_v2 = vpop.f32.mrb[5].mxu1  ;;  %v888_v61 = vld [vmem:[#allocation2 + $0xd8] sm:$0xff] }
 0x675   :  { %v722_v3 = vmul.f32 %v683_v2, %v1692_v49  ;;  %v892_v2 = vlaneseq }
 0x677   :  { %v730_v5 = vadd.f32 %v723_v63, %v722_v3  ;;  %v1361_v6 = vpop.f32.mrb[6].mxu1  ;;  %v1427_v63 = vpack.c.bf16 %v888_v61, %v884_v62  ;;  %v893_v3 = vshrl.u32 %v892_v2, 7 }
 0x678   :  { %v693_v7 = vpop.f32.mrb[7].mxu1  ;;  %v725_v9 = vmul.f32 %v1361_v6, %v1699_v50  ;;  %v753_v50 = vpop.permute.xlu1 %752 }
 0x679   :  { %v724_v8 = vmul.f32 %v693_v7, %v1706_v51  ;;  %v898_v6 = vsub.s32 1, %v893_v3  ;;  %v902_v7 = vsub.s32 2, %v893_v3 }
 0x67b   :  { %v731_v10 = vadd.f32 %v730_v5, %v724_v8  ;;  %v1364_v11 = vpop.f32.mrb[8].mxu1  ;;  %v890_v5 = vld [vmem:[%s1875_s2 + $0x2] sm:$0x1f]  ;;  %v906_v8 = vsub.s32 3, %v893_v3 }
 0x67c   :  { %v727_v12 = vmul.f32 %v1364_v11, %v1713_v52  ;;  %v703_v13 = vpop.f32.mrb[9].mxu1  ;;  %v903_v11 = vrot.slane %v890_v5, %v902_v7 }
 0x67d   :  { %v732_v14 = vadd.f32 %v731_v10, %v725_v9  ;;  %v726_v18 = vmul.f32 %v703_v13, %v1720_v53  ;;  %v899_v9 = vrot.slane %v890_v5, %v898_v6  ;;  %v907_v10 = vrot.slane %v890_v5, %v906_v8 }
 0x67f   :  { %v733_v21 = vadd.f32 %v727_v12, %v726_v18  ;;  %v1367_v48 = vpop.f32.mrb[10].mxu1  ;;  %1376 = vmatprep.mubr.msk.f32.mxu0 %vm43_vm0, %v732_v14  ;;  %v894_v12 = vsub.s32 0, %v893_v3  ;;  %v910_v14 = vsub.s32 4, %v893_v3 }
 0x680   :  { %v713_v49 = vpop.f32.mrb[11].mxu1  ;;  %v729_v23 = vmul.f32 %v1367_v48, %v1727_v54 }
 0x681   :  { %v728_v22 = vmul.f32 %v713_v49, %v1734_v55  ;;  %v895_v13 = vrot.slane %v890_v5, %v894_v12  ;;  %v911_v18 = vrot.slane %v890_v5, %v910_v14 }
 0x683   :  { %v734_v51 = vadd.f32 %v733_v21, %v728_v22 }
 0x685   :  { %v735_v24 = vadd.f32 %v734_v51, %v729_v23 }
 0x687   :  { %1377 = vmatmul.mubr.msk.f32.vlgmr.msra.gmra.mrb[10].mxu0 %vm43_vm0, %v735_v24 }
 0x688   :  { %1424 = vmatpush1.bf16.msra.mxu0 %v1423_v42 }
 0x689   :  { %1426 = vmatprep.subr.bf16.mxu0 %v1425_v60 }
 0x68c   :  { %1428 = vmatpush1.bf16.msra.mxu0 %v1427_v63 }
 0x75a   :  { %v1378_v46 = vpop.f32.mrb[10].mxu0 }
 0x75b   :  { %v833_v52 = vadd.f32 %v1378_v46, %v753_v50  ;;  %v827_v47 = vpop.f32.mrb[11].mxu0 }
 0x75c   :  { %v828_v25 = vadd.f32 %v827_v47, %v753_v50 }
 0x75d   :  { %v1811_v53 = vadd.f32 %v833_v52, %v1620_v1 }
 0x75e   :  { %v1814_v26 = vadd.f32 %v828_v25, %v1615_v0 }
 0x75f   :  { %v841_v55 = vsel %vm43_vm0, %v1811_v53, 0.0 }
 0x760   :  { %842 = vadd.xlane.f32.xlu0 %v841_v55  ;;  %v838_v54 = vsel %vm43_vm0, %v1814_v26, 0.0 }
 0x761   :  { %839 = vadd.xlane.f32.xlu1 %v838_v54 }
 0x772   :  { %864 = vrot.lane.b32.xlu1 %v1629_v4, %s1567_s26 }
 0x776   :  { %914 = vrot.lane.b32.xlu1 %v899_v9, %s1568_s8 }
 0x77a   :  { %916 = vrot.lane.b32.xlu1 %v903_v11, %s1568_s8 }
 0x77e   :  { %912 = vrot.lane.b32.xlu1 %v895_v13, %s1568_s8 }
 0x782   :  { %920 = vrot.lane.b32.xlu1 %v911_v18, %s1568_s8 }
 0x7ed   :  { %v843_v19 = vpop.xlane.xlu0 %842 }
 0x7ee   :  { %v845_v20 = vmul.f32 0.03125, %v843_v19  ;;  %v840_v27 = vpop.xlane.xlu1 %839 }
 0x7ef   :  { %v844_v15 = vmul.f32 0.03125, %v840_v27  ;;  %v1124_v27 = vld [vmem:[#allocation2 + $0x30] sm:$0xff] }
 0x7f0   :  { %v1823_v1 = vsub.f32 %v1811_v53, %v845_v20 }
 0x7f1   :  { %v1826_v0 = vsub.f32 %v1814_v26, %v844_v15  ;;  %v1126_v15 = vld [vmem:[#allocation2 + $0x70] sm:$0xff] }
 0x7f2   :  { %v849_v43 = vmul.f32 %v1823_v1, %v1823_v1  ;;  %v865_v50 = vpop.permute.xlu1 %864 }
 0x7f3   :  { %v848_v16 = vmul.f32 %v1826_v0, %v1826_v0 }
 0x7f4   :  { %v853_v28 = vsel %vm43_vm0, %v849_v43, 0.0 }
 0x7f5   :  { %v850_v17 = vsel %vm43_vm0, %v848_v16, 0.0  ;;  %v1123_v16 = vld [vmem:[#allocation2 + $0x28] sm:$0xff] }
 0x7f6   :  { %851 = vadd.xlane.f32.xlu0 %v850_v17  ;;  %v1125_v17 = vld [vmem:[#allocation2 + $0x68] sm:$0xff]  ;;  %v915_v33 = vpop.permute.xlu1 %914 }
 0x7f7   :  { %v1431_v43 = vpack.c.bf16 %v1125_v17, %v1123_v16 }
 0x7fa   :  { %854 = vadd.xlane.f32.xlu0 %v853_v28  ;;  %v1130_v28 = vld [vmem:[#allocation2 + $0xf0] sm:$0xff]  ;;  %v917_v34 = vpop.permute.xlu1 %916 }
 0x7fb   :  { %v924_v42 = vsel %vm922_vm3, %v915_v33, %v917_v34 }
 0x7fe   :  { %v913_v35 = vpop.permute.xlu1 %912 }
 0x7ff   :  { %v923_v36 = vsel %vm922_vm3, %v913_v35, %v915_v33 }
 0x802   :  { %v921_v11 = vpop.permute.xlu1 %920 }
 0x810   :  { %869 = vrot.lane.b32.xlu0 %v1629_v4, %s1569_s3  ;;  %v1570_v4 = vmov 0.0  }
 0x811   :  { %1001 = vmatprep.mubr.f32.mxu1 %v1570_v4  ;;  %1078 = vmatprep.mubr.f32.mxu0 %v1570_v4 }
 0x814   :  { %918 = vrot.lane.b32.xlu0 %v907_v10, %s1568_s8 }
 0x883   :  { %v852_v21 = vpop.xlane.xlu0 %851 }
 0x884   :  { %v856_v48 = vmul.f32 0.03125, %v852_v21 }
 0x886   :  { %v858_v49 = vadd.f32 1e-05, %v856_v48 }
 0x887   :  { %v855_v22 = vpop.xlane.xlu0 %854 }
 0x888   :  { %1497 = vrsqrt.f32 %v858_v49  ;;  %v857_v23 = vmul.f32 0.03125, %v855_v22 }
 0x88a   :  { %v859_v51 = vadd.f32 1e-05, %v857_v23 }
 0x88b   :  { %v870_v52 = vpop.permute.xlu0 %869 }
 0x88c   :  { %1499 = vrsqrt.f32 %v859_v51 }
 0x88f   :  { %v919_v12 = vpop.permute.xlu0 %918 }
 0x890   :  { %v926_v13 = vsel %vm922_vm3, %v919_v12, %v921_v11  ;;  %v925_v18 = vsel %vm922_vm3, %v917_v34, %v919_v12 }
 0x892   :  { %v1498_v24 = vpop.eup %1497 }
 0x893   :  { %v862_v46 = vmul.f32 %v1498_v24, %v1826_v0  ;;  %v1429_v0 = vpack.c.bf16 %v1126_v15, %v1124_v27 }
 0x895   :  { %v867_v47 = vmul.f32 %v865_v50, %v862_v46  ;;  %1430 = vmatprep.subr.bf16.mxu1 %v1429_v0 }
 0x896   :  { %v1500_v25 = vpop.eup %1499 }
 0x897   :  { %v863_v55 = vmul.f32 %v1500_v25, %v1823_v1  ;;  %v872_v54 = vadd.f32 %v870_v52, %v867_v47  ;;  %v1128_v1 = vld [vmem:[#allocation2 + $0xb0] sm:$0xff] }
 0x898   :  { %v1433_v29 = vpack.c.bf16 %v1130_v28, %v1128_v1 }
 0x899   :  { %v868_v19 = vmul.f32 %v865_v50, %v863_v55  ;;  %1262 = vmatmul.mubr.msk.f32.vlgmr.msra.gmra.mrb[12].mxu1 %vm43_vm0, %v872_v54  ;;  %1264 = vmatmul.mubr.msk.f32.vlgmr.msra.gmra.mrb[12].mxu0 %vm43_vm0, %v872_v54 }
 0x89a   :  { %1007 = vmatprep.mubr.f32.mxu1 %v1570_v4  ;;  %1084 = vmatprep.mubr.f32.mxu0 %v1570_v4 }
 0x89b   :  { %v873_v20 = vadd.f32 %v870_v52, %v868_v19  ;;  %1432 = vmatpush1.bf16.xpose.msra.mxu1 %v1431_v43 }
 0x89c   :  { %1434 = vmatprep.subr.bf16.mxu1 %v1433_v29 }
 0x89d   :  { %1263 = vmatmul.mubr.msk.f32.gmra.mrb[14].mxu1 %vm43_vm0, %v873_v20  ;;  %1265 = vmatmul.mubr.msk.f32.gmra.mrb[14].mxu0 %vm43_vm0, %v873_v20  ;;  %v1270_v20 = vld [vmem:[%s1875_s2 + $0x2] ss:$0 sm:$0xff] }
 0x8a3   :  { %1436 = vmatpush1.bf16.xpose.msra.mxu1 %v1435_v32 }
 0x96c   :  { %v1003_v37 = vpop.f32.mrb[12].mxu1  ;;  %v1080_v39 = vpop.f32.mrb[12].mxu0 }
 0x96d   :  { %v1004_v41 = vadd.f32 %v1003_v37, %v923_v36  ;;  %v1005_v44 = vpop.f32.mrb[13].mxu1  ;;  %v1082_v45 = vpop.f32.mrb[13].mxu0  ;;  %v1081_v49 = vadd.f32 %v1080_v39, %v925_v18 }
 0x96e   :  { %v1006_v38 = vadd.f32 %v1005_v44, %v924_v42  ;;  %v1083_v23 = vadd.f32 %v1082_v45, %v926_v13 }
 0x96f   :  { %v1266_v56 = vmul.f32 -1.442695, %v1004_v41 }
 0x970   :  { %v1267_v40 = vmul.f32 -1.442695, %v1006_v38  ;;  %v1009_v57 = vpop.f32.mrb[14].mxu1  ;;  %v1086_v58 = vpop.f32.mrb[14].mxu0 }
 0x971   :  { %1501 = vpow2.f32 %v1266_v56  ;;  %v1010_v60 = vadd.f32 %v1009_v57, %v923_v36  ;;  %v1011_v59 = vpop.f32.mrb[15].mxu1  ;;  %v1088_v62 = vpop.f32.mrb[15].mxu0  ;;  %v1087_v47 = vadd.f32 %v1086_v58, %v925_v18 }
 0x972   :  { %1503 = vpow2.f32 %v1267_v40  ;;  %v1012_v61 = vadd.f32 %v1011_v59, %v924_v42  ;;  %v1089_v55 = vadd.f32 %v1088_v62, %v926_v13 }
 0x973   :  { %v1268_v63 = vmul.f32 -1.442695, %v1010_v60 }
 0x974   :  { %v1269_v4 = vmul.f32 -1.442695, %v1012_v61 }
 0x975   :  { %1505 = vpow2.f32 %v1268_v63 }
 0x976   :  { %1507 = vpow2.f32 %v1269_v4 }
 0x97b   :  { %v1502_v2 = vpop.eup %1501 }
 0x97c   :  { %v1504_v3 = vpop.eup %1503  ;;  %v1103_v5 = vadd.f32 1.0, %v1502_v2 }
 0x97d   :  { %v1104_v6 = vadd.f32 1.0, %v1504_v3 }
 0x97e   :  { %1509 = vrcp.f32 %v1103_v5 }
 0x97f   :  { %v1506_v7 = vpop.eup %1505  ;;  %1511 = vrcp.f32 %v1104_v6 }
 0x980   :  { %v1508_v8 = vpop.eup %1507  ;;  %v1105_v9 = vadd.f32 1.0, %v1506_v7 }
 0x981   :  { %v1106_v10 = vadd.f32 1.0, %v1508_v8 }
 0x982   :  { %1513 = vrcp.f32 %v1105_v9 }
 0x983   :  { %1515 = vrcp.f32 %v1106_v10 }
 0x988   :  { %v1510_v14 = vpop.eup %1509 }
 0x989   :  { %v1512_v21 = vpop.eup %1511  ;;  %v1115_v48 = vmul.f32 %v1510_v14, %v1004_v41 }
 0x98a   :  { %v1116_v22 = vmul.f32 %v1512_v21, %v1006_v38 }
 0x98b   :  { %v1119_v51 = vmul.f32 %v1115_v48, %v1081_v49 }
 0x98c   :  { %v1514_v24 = vpop.eup %1513  ;;  %v1120_v50 = vmul.f32 %v1116_v22, %v1083_v23 }
 0x98d   :  { %v1516_v46 = vpop.eup %1515  ;;  %v1117_v52 = vmul.f32 %v1514_v24, %v1010_v60 }
 0x98e   :  { %v1118_v25 = vmul.f32 %v1516_v46, %v1012_v61  ;;  %1202 = vmatprep.mubr.f32.mxu1 %v1120_v50 }
 0x98f   :  { %v1121_v54 = vmul.f32 %v1117_v52, %v1087_v47  ;;  %1203 = vmatmul.mubr.f32.vlgmr.msra.gmra.mrb[16].mxu1 %v1119_v51 }
 0x990   :  { %v1122_v19 = vmul.f32 %v1118_v25, %v1089_v55 }
 0x992   :  { %1207 = vmatprep.mubr.f32.mxu1 %v1122_v19 }
 0x993   :  { %1208 = vmatmul.mubr.f32.gmra.mrb[18].mxu1 %v1121_v54 }
 0xa62   :  { %v1204_v27 = vpop.f32.mrb[16].mxu1 }
 0xa63   :  { %v1205_v15 = vadd.f32 %v1270_v20, %v1204_v27  ;;  %v1206_v0 = vpop.f32.mrb[17].mxu1 }
 0xa65   :  { %v1213_v16 = vadd.f32 %v1205_v15, %v1814_v26 }
 0xa66   :  { %v1209_v17 = vpop.f32.mrb[18].mxu1 }
 0xa67   :  { %1215 = vst.msk [vmem:[#allocation5] sm:$0xff] %vm43_vm0, %v1213_v16  ;;  %v1210_v43 = vadd.f32 %v1270_v20, %v1209_v17  ;;  %v1211_v1 = vpop.f32.mrb[19].mxu1 }
 0xa69   :  { %v1214_v28 = vadd.f32 %v1210_v43, %v1811_v53 }
 0xa6b   :  { %1216 = vst.msk [vmem:[#allocation5 + $0x8] sm:$0xff] %vm43_vm0, %v1214_v28 }
 0xa6c   :  { %1550 = shalt.err (!%p1547_p12)
}
 0xa6d   :  { %s1551_s7 = scalar_lea.hbm %s1877_s4, 256 }
 0xa6e   :  { %p1552_p13 = scmp.ne.s32.totalorder %s1877_s4, %s1551_s7  ;;  %p1555_p0 = scmp.lt.u32.totalorder %s1551_s7, %s1877_s4 }
 0xa70   :  { %p1557_p1 = pnand %p1555_p0, %p1552_p13 }
 0xa72   :  { %1560 = shalt.err (!%p1557_p1)
}
 0xa73   :  { %s1572_s11 = smov 128   ;;  %s1573_s12 = smov 8  }
 0xa74   :  { %1228 = dma.vmem_to_hbm [thread:$0]  %s1223_s5, 256, %s1877_s4, [#allocation4], %s1572_s11, %s1572_s11, %s1573_s12  }
 0xa75   :  { %1563 = dma.done.wait [#allocation4], 256  }
 0xa76   :  { %1564 = vsyncadd [#allocation4], 4294967040 }
 0xa77   :  { %1232 = vsyncpa [#allocation3], 1 }
 0xa78   :  { %1233 = vsyncpa [#allocation4], 1 }

</bundles_post_ra>
